<compile_context>
chip_gen: v7x
topology: tpu7x:2x2x1
jax: 0.10.0
libtpu: 0.0.40
codegen_flags: <defaults>
</compile_context>

<pallas_src>
import math

import jax
import jax.numpy as jnp
from jax.experimental import pallas as pl
from jax.experimental.pallas import tpu as pltpu

_PALLAS_MIN_BYTES = 64 * 1024          # below this, fused XLA add wins on launch overhead
_TARGET_BLOCK_BYTES = 4 * 1024 * 1024  # ~4 MiB per largest-dtype streamed buffer
_SPLIT_MIN_BYTES = 2 * 1024 * 1024     # force >=2 grid steps above this (v7x dual-TC)
_LANE_CANDIDATES = (2048, 1024, 512, 256, 128)


def _vmem_limit_bytes():
    # Explicit scoped-VMEM limit so larger-than-default tiles compile on every
    # generation (v5e default scoped limit is 16 MiB even though physical is 128 MiB;
    # v7x physical is 64 MiB, so leave headroom).
    try:
        cap = int(pltpu.get_tpu_info().vmem_capacity_bytes)
        return min(48 * 1024 * 1024, (cap * 3) // 4)
    except Exception:
        return 32 * 1024 * 1024


def _pick_lane(n_elems):
    for lane in _LANE_CANDIDATES:
        if n_elems % lane == 0:
            return lane
    return None


def _sublane_granule(*dtypes):
    # f32 -> 8 rows, bf16/f16 -> 16, int8/fp8 -> 32 (sublane packing of narrow dtypes).
    min_itemsize = min(jnp.dtype(d).itemsize for d in dtypes)
    return max(8, 32 // max(1, min_itemsize))


def _choose_block_rows(rows, lane, itemsizes, granule, total_out_bytes, vmem_limit):
    max_itemsize = max(itemsizes)
    sum_itemsize = sum(itemsizes)
    target = _TARGET_BLOCK_BYTES // (lane * max_itemsize)
    # Stay within ~80% of the scoped-VMEM limit (all streams are double-buffered).
    by_vmem = int(vmem_limit * 0.8) // (2 * lane * sum_itemsize)
    target = min(target, by_vmem)
    target = max(granule, (target // granule) * granule)
    if target >= rows:
        block_rows = rows  # single full-extent block (always legal, even if rows % 8 != 0)
        # Give both v7x TensorCores work for mid-size tensors (harmless on 1-TC chips).
        if total_out_bytes >= _SPLIT_MIN_BYTES and rows >= 2 * granule:
            half = -(-rows // 2)
            half = -(-half // granule) * granule
            if half < rows:
                block_rows = half
    else:
        block_rows = target
    return block_rows


def _make_full_kernel(alpha, compute_dtype):
    """out = x + alpha * y; both operands streamed raw, casts done on the VPU."""
    def kernel(x_ref, y_ref, o_ref):
        x = x_ref[...].astype(compute_dtype)
        y = y_ref[...].astype(compute_dtype)
        if alpha == 1:
            r = x + y
        else:
            r = x + jnp.asarray(alpha, compute_dtype) * y
        o_ref[...] = r.astype(o_ref.dtype)
    return kernel


def _make_scalar_kernel(alpha, alpha_on_big, compute_dtype):
    """One operand is a single scalar held in SMEM; the big operand is streamed."""
    def kernel(s_ref, big_ref, o_ref):
        s = s_ref[0].astype(compute_dtype)
        b = big_ref[...].astype(compute_dtype)
        a = jnp.asarray(alpha, compute_dtype)
        if alpha_on_big:   # `input` was the scalar: out = s + alpha * other
            r = s + (b if alpha == 1 else a * b)
        else:              # `other` was the scalar: out = input + alpha * s
            r = (s if alpha == 1 else a * s) + b
        o_ref[...] = r.astype(o_ref.dtype)
    return kernel


def _xla_add(x, y, alpha, out_shape, out_dtype, compute_dtype):
    # Single fused XLA pass — roofline-optimal for tiny tensors, partial
    # broadcasts and ragged sizes.
    if compute_dtype is None:
        compute_dtype = out_dtype
    xc = x.astype(compute_dtype)
    yc = y.astype(compute_dtype)
    if alpha != 1:
        yc = yc * jnp.asarray(alpha, compute_dtype)
    return jnp.broadcast_to(xc + yc, out_shape).astype(out_dtype)


def deephi_add(input, other, alpha=1):
    """Pallas TPU implementation of deephi_Add.forward (no-quant float path):
        output = input + alpha * other   (numpy/torch-style broadcasting)

    `alpha` must be a static Python number (it is a Python scalar in the torch
    module as well).  Contract: floating dtypes are computed in f32 (matches
    torch's opmath upcast for half/bfloat16) and rounded to the promoted output
    dtype; integer dtypes are computed in int32 and `alpha` must be integral
    (torch rejects fractional alpha on integral tensors).
    """
    x = jnp.asarray(input)
    y = jnp.asarray(other)
    out_shape = jnp.broadcast_shapes(x.shape, y.shape)
    out_dtype = jnp.promote_types(x.dtype, y.dtype)
    n_elems = math.prod(out_shape)

    if jnp.issubdtype(out_dtype, jnp.floating):
        compute_dtype = jnp.float32
    elif jnp.issubdtype(out_dtype, jnp.integer):
        if float(alpha) != float(int(alpha)):
            raise ValueError(
                "deephi_add: alpha must be an integer when adding integral "
                "tensors (matches torch.add semantics).")
        alpha = int(alpha)
        compute_dtype = jnp.int32
    else:
        compute_dtype = None  # bool/complex etc. -> XLA fallback

    out_itemsize = jnp.dtype(out_dtype).itemsize
    out_bytes = n_elems * out_itemsize
    lane = _pick_lane(n_elems) if n_elems > 0 else None

    x_full = x.size == n_elems
    y_full = y.size == n_elems
    full_path = x_full and y_full
    scalar_path = (x_full and y.size == 1) or (y_full and x.size == 1)

    use_pallas = (
        compute_dtype is not None
        and n_elems > 0
        and out_bytes >= _PALLAS_MIN_BYTES
        and lane is not None
        and (full_path or scalar_path)
    )
    if not use_pallas:
        # TODO(synk): stream non-scalar broadcasts (e.g. per-channel bias) and
        # ragged (n % 128 != 0) sizes through Pallas with a custom index_map on
        # an unflattened layout instead of the fused single-pass XLA fallback.
        return _xla_add(x, y, alpha, out_shape, out_dtype, compute_dtype)

    rows = n_elems // lane
    vmem_limit = _vmem_limit_bytes()
    compiler_params = pltpu.CompilerParams(
        dimension_semantics=("parallel",),   # grid axis shards across TensorCores
        vmem_limit_bytes=vmem_limit,
    )

    def block_spec(br):
        return pl.BlockSpec((br, lane), lambda i: (i, 0))

    if full_path:
        itemsizes = (jnp.dtype(x.dtype).itemsize, jnp.dtype(y.dtype).itemsize, out_itemsize)
        granule = _sublane_granule(x.dtype, y.dtype, out_dtype)
        block_rows = _choose_block_rows(rows, lane, itemsizes, granule, out_bytes, vmem_limit)
        grid = (pl.cdiv(rows, block_rows),)
        out2d = pl.pallas_call(
            _make_full_kernel(alpha, compute_dtype),
            out_shape=jax.ShapeDtypeStruct((rows, lane), out_dtype),
            grid=grid,
            in_specs=[block_spec(block_rows), block_spec(block_rows)],
            out_specs=block_spec(block_rows),
            compiler_params=compiler_params,
        )(x.reshape(rows, lane), y.reshape(rows, lane))
    else:
        # Exactly one operand is a single element: stream the big one, pass the
        # scalar unbroadcast through SMEM (no full-size broadcast in HBM).
        big, small, alpha_on_big = (x, y, False) if x_full else (y, x, True)
        itemsizes = (jnp.dtype(big.dtype).itemsize, out_itemsize)
        granule = _sublane_granule(big.dtype, out_dtype)
        block_rows = _choose_block_rows(rows, lane, itemsizes, granule, out_bytes, vmem_limit)
        grid = (pl.cdiv(rows, block_rows),)
        smem_dtype = jnp.float32 if compute_dtype == jnp.float32 else jnp.int32
        s_arr = small.reshape((1,)).astype(smem_dtype)   # single element: negligible
        out2d = pl.pallas_call(
            _make_scalar_kernel(alpha, alpha_on_big, compute_dtype),
            out_shape=jax.ShapeDtypeStruct((rows, lane), out_dtype),
            grid=grid,
            in_specs=[pl.BlockSpec(memory_space=pltpu.MemorySpace.SMEM),
                      block_spec(block_rows)],
            out_specs=block_spec(block_rows),
            compiler_params=compiler_params,
        )(s_arr, big.reshape(rows, lane))

    return out2d.reshape(out_shape)


if __name__ == "__main__":
    key = jax.random.PRNGKey(0)
    k1, k2, k3, k4, k5, k6 = jax.random.split(key, 6)

    # 1) Small residual add -> fused-XLA fallback (below the Pallas threshold).
    x_small = jax.random.normal(k1, (2, 4, 16, 16), dtype=jnp.float32)
    y_small = jax.random.normal(k2, (2, 4, 16, 16), dtype=jnp.float32)
    out_small = deephi_add(x_small, y_small, alpha=1.0)

    # 2) Larger residual add with alpha != 1 -> Pallas streaming path.
    x_big = jax.random.normal(k3, (4, 8, 32, 32), dtype=jnp.float32)
    y_big = jax.random.normal(k4, (4, 8, 32, 32), dtype=jnp.float32)
    out_big = deephi_add(x_big, y_big, alpha=0.5)

    # 3) Mixed dtype (bf16 `other`) -> cast happens inside the kernel, no wrapper astype.
    y_bf16 = jax.random.normal(k5, (4, 8, 32, 32), dtype=jnp.bfloat16)
    out_mixed = deephi_add(x_big, y_bf16, alpha=0.25)

    # 4) Scalar `other` -> streamed x + SMEM scalar, no broadcast materialization.
    out_scalar = deephi_add(x_big, jnp.asarray(3.0, jnp.float32), alpha=2.0)

    # 5) Per-channel bias broadcast -> roofline-optimal fused XLA fallback.
    bias = jax.random.normal(k6, (1, 8, 1, 1), dtype=jnp.float32)
    out_bias = deephi_add(x_big, bias, alpha=2.0)

    # 6) Ragged element count (not a multiple of 128) above the threshold -> XLA fallback.
    x_odd = jax.random.normal(k1, (3, 7, 31, 31), dtype=jnp.float32)
    y_odd = jax.random.normal(k2, (3, 7, 31, 31), dtype=jnp.float32)
    out_odd = deephi_add(x_odd, y_odd, alpha=1.5)

    # 7) ~4 MiB tensor -> multi-step grid (>=2 blocks so both v7x TCs get work).
    x_wide = jax.random.normal(k3, (8, 512, 256), dtype=jnp.float32)
    y_wide = jax.random.normal(k4, (8, 512, 256), dtype=jnp.float32)
    out_wide = deephi_add(x_wide, y_wide, alpha=1.0)

    jax.block_until_ready(
        (out_small, out_big, out_mixed, out_scalar, out_bias, out_odd, out_wide))

    ref_small = x_small + 1.0 * y_small
    ref_big = x_big + 0.5 * y_big
    ref_mixed = x_big + 0.25 * y_bf16.astype(jnp.float32)
    ref_scalar = x_big + 2.0 * 3.0
    ref_bias = x_big + 2.0 * bias
    ref_odd = x_odd + 1.5 * y_odd
    ref_wide = x_wide + y_wide

    for out, ref in ((out_small, ref_small), (out_big, ref_big),
                     (out_mixed, ref_mixed), (out_scalar, ref_scalar),
                     (out_bias, ref_bias), (out_odd, ref_odd),
                     (out_wide, ref_wide)):
        assert out.shape == ref.shape, (out.shape, ref.shape)
        assert out.dtype == ref.dtype, (out.dtype, ref.dtype)
        assert jnp.allclose(out, ref, atol=1e-6, rtol=1e-6)

    print("KERNEL_OK")
</pallas_src>

<mosaic_0001>
module attributes {stable_mosaic.version = 11 : i64} {
  func.func @kernel(%arg0: i32, %arg1: memref<16x2048xf32, #tpu.memory_space<vmem>>, %arg2: memref<16x2048xf32, #tpu.memory_space<vmem>>, %arg3: memref<16x2048xf32, #tpu.memory_space<vmem>>) attributes {dimension_semantics = [#tpu.dimension_semantics<parallel>], iteration_bounds = array<i64: 1>, scalar_prefetch = 0 : i64, scratch_operands = 0 : i64, tpu.core_type = #tpu.core_type<tc>, window_params = [{transform_indices = @transform_0, window_bounds = array<i64: 16, 2048>}, {transform_indices = @transform_1, window_bounds = array<i64: 16, 2048>}, {transform_indices = @transform_2, window_bounds = array<i64: 16, 2048>}]} {
    %c0 = arith.constant 0 : index
    %c0_0 = arith.constant 0 : index
    %0 = vector.load %arg1[%c0, %c0_0] : memref<16x2048xf32, #tpu.memory_space<vmem>>, vector<16x2048xf32>
    %c0_1 = arith.constant 0 : index
    %c0_2 = arith.constant 0 : index
    %1 = vector.load %arg2[%c0_1, %c0_2] : memref<16x2048xf32, #tpu.memory_space<vmem>>, vector<16x2048xf32>
    %cst = arith.constant 5.000000e-01 : f32
    %2 = vector.broadcast %cst : f32 to vector<16x2048xf32>
    %3 = arith.mulf %2, %1 : vector<16x2048xf32>
    %4 = arith.addf %0, %3 : vector<16x2048xf32>
    %c0_3 = arith.constant 0 : index
    %c0_4 = arith.constant 0 : index
    %5 = vector.load %arg3[%c0_3, %c0_4] : memref<16x2048xf32, #tpu.memory_space<vmem>>, vector<16x2048xf32>
    tpu.vector_store %arg3[%c0_3, %c0_4], %4 {strides = array<i32>} : memref<16x2048xf32, #tpu.memory_space<vmem>>, vector<16x2048xf32>,
    return
  }
  func.func @transform_0(%arg0: i32) -> (i32, i32) {
    %c0_i32 = arith.constant 0 : i32
    %c0_i32_0 = arith.constant 0 : i32
    return %arg0, %c0_i32 : i32, i32
  }
  func.func @transform_1(%arg0: i32) -> (i32, i32) {
    %c0_i32 = arith.constant 0 : i32
    %c0_i32_0 = arith.constant 0 : i32
    return %arg0, %c0_i32 : i32, i32
  }
  func.func @transform_2(%arg0: i32) -> (i32, i32) {
    %c0_i32 = arith.constant 0 : i32
    %c0_i32_0 = arith.constant 0 : i32
    return %arg0, %c0_i32 : i32, i32
  }
}

</mosaic_0001>

<bundles_post_ra>
// kernel: tpu_custom_call.1
= control target key start
LH: loop header
LB: loop body
LE: loop exit
PB: predicated region body
PF: predicated region fallthrough
CT: control target
= control target key end

     0   :  { %7 = vsyncpa [#allocation3], 0  ;;  %s360_s0 = inlined_call_operand.hbm [shape: f32[16,2048], index: 0, kind: input, shape index: {}]   ;;  %s361_s1 = inlined_call_operand.hbm [shape: f32[16,2048], index: 1, kind: input, shape index: {}]   ;;  %s362_s2 = inlined_call_operand.hbm [shape: f32[16,2048], index: 2, kind: output, shape index: {}]  }
   0x1   :  { %8 = vsyncpa [#allocation6], 0 }
   0x2   :  { %9 = vsyncpa [#allocation4], 0  ;;  %s295_s9 = smov [#allocation2]   ;;  %s223_s13 = scalar_lea.hbm %s360_s0, 4096 }
   0x3   :  { %s15_s10 = sshll.u32 %s295_s9, 4  ;;  %p224_p0 = scmp.ne.s32.totalorder %s360_s0, %s223_s13  ;;  %s16_s10 = int_to_ptr.vmem [resolvable:$true] %s15_s10 }
   0x4   :  { %p227_p1 = scmp.lt.u32.totalorder %s223_s13, %s360_s0 }
   0x6   :  { %p229_p2 = pnand %p227_p1, %p224_p0 }
   0x8   :  { %232 = shalt.err (!%p229_p2)
}
   0x9   :  { %s233_s18 = scalar_lea.vmem %s16_s10, 4096  ;;  %p238_p4 = scmp.lt.s32.totalorder %s16_s10, %s16_s10 }
   0xa   :  { %p234_p3 = scmp.ne.s32.totalorder %s16_s10, %s233_s18  ;;  %p239_p5 = scmp.lt.s32.totalorder %s233_s18, %s233_s18 }
   0xc   :  { %p240_p6 = por %p239_p5, %p238_p4 }
   0xe   :  { %p241_p7 = pnand %p240_p6, %p234_p3 }
  0x10   :  { %244 = shalt.err (!%p241_p7)
}
  0x11   :  { %s296_s19 = smov 2048   ;;  %s297_s20 = smov 128  }
  0x12   :  { %21 = dma.hbm_to_vmem [thread:$0]  %s360_s0, 4096, %s16_s10, [#allocation3], %s296_s19, %s296_s19, %s297_s20  }
  0x13   :  { %s298_s23 = smov [#allocation5]   ;;  %s245_s27 = scalar_lea.hbm %s361_s1, 4096 }
  0x14   :  { %s27_s24 = sshll.u32 %s298_s23, 4  ;;  %p246_p8 = scmp.ne.s32.totalorder %s361_s1, %s245_s27  ;;  %s28_s24 = int_to_ptr.vmem [resolvable:$true] %s27_s24 }
  0x15   :  { %p249_p9 = scmp.lt.u32.totalorder %s245_s27, %s361_s1 }
  0x17   :  { %p251_p10 = pnand %p249_p9, %p246_p8 }
  0x19   :  { %254 = shalt.err (!%p251_p10)
}
  0x1a   :  { %s255_s4 = scalar_lea.vmem %s28_s24, 4096  ;;  %p260_p12 = scmp.lt.s32.totalorder %s28_s24, %s28_s24 }
  0x1b   :  { %p256_p11 = scmp.ne.s32.totalorder %s28_s24, %s255_s4  ;;  %p261_p13 = scmp.lt.s32.totalorder %s255_s4, %s255_s4 }
  0x1d   :  { %p262_p0 = por %p261_p13, %p260_p12 }
  0x1f   :  { %p263_p1 = pnand %p262_p0, %p256_p11 }
  0x21   :  { %266 = shalt.err (!%p263_p1)
}
  0x22   :  { %33 = dma.hbm_to_vmem [thread:$0]  %s361_s1, 4096, %s28_s24, [#allocation6], %s296_s19, %s296_s19, %s297_s20  }
  0x23   :  { %289 = dma.done.wait [#allocation3], 4096  }
  0x24   :  { %290 = vsyncadd [#allocation3], 4294963200 }
  0x25   :  { %291 = dma.done.wait [#allocation6], 4096  }
  0x26   :  { %292 = vsyncadd [#allocation6], 4294963200  ;;  %v40_v0 = vld [vmem:[#allocation2] sm:$0xff]  ;;  %v41_v2 = vld [vmem:[#allocation2 + $0x8] sm:$0xff]  ;;  %s299_s1 = smov [#allocation7]  }
  0x27   :  { %v72_v1 = vld [vmem:[#allocation5] sm:$0xff]  ;;  %v73_v4 = vld [vmem:[#allocation5 + $0x8] sm:$0xff]  ;;  %v42_v5 = vld [vmem:[#allocation2 + $0x10] sm:$0xff]  ;;  %s205_s6 = sshll.u32 %s299_s1, 4  ;;  %s206_s6 = int_to_ptr.vmem [resolvable:$true] %s205_s6 }
  0x28   :  { %v104_v3 = vmul.f32 0.5, %v72_v1  ;;  %v74_v6 = vld [vmem:[#allocation5 + $0x10] sm:$0xff]  ;;  %v105_v7 = vmul.f32 0.5, %v73_v4  ;;  %v43_v9 = vld [vmem:[#allocation2 + $0x18] sm:$0xff]  ;;  %v44_v11 = vld [vmem:[#allocation2 + $0x20] sm:$0xff]  ;;  %s267_s7 = scalar_lea.vmem %s206_s6, 4096  ;;  %p272_p3 = scmp.lt.s32.totalorder %s206_s6, %s206_s6 }
  0x29   :  { %v106_v8 = vmul.f32 0.5, %v74_v6  ;;  %v75_v10 = vld [vmem:[#allocation5 + $0x18] sm:$0xff]  ;;  %v76_v14 = vld [vmem:[#allocation5 + $0x20] sm:$0xff]  ;;  %v45_v15 = vld [vmem:[#allocation2 + $0x28] sm:$0xff]  ;;  %p268_p2 = scmp.ne.s32.totalorder %s206_s6, %s267_s7  ;;  %p273_p4 = scmp.lt.s32.totalorder %s267_s7, %s267_s7 }
  0x2a   :  { %v136_v12 = vadd.f32 %v104_v3, %v40_v0  ;;  %v107_v13 = vmul.f32 0.5, %v75_v10  ;;  %v77_v16 = vld [vmem:[#allocation5 + $0x28] sm:$0xff]  ;;  %v137_v17 = vadd.f32 %v105_v7, %v41_v2  ;;  %v108_v19 = vmul.f32 0.5, %v76_v14  ;;  %v46_v21 = vld [vmem:[#allocation2 + $0x30] sm:$0xff]  ;;  %v47_v23 = vld [vmem:[#allocation2 + $0x38] sm:$0xff] }
  0x2b   :  { %v138_v18 = vadd.f32 %v106_v8, %v42_v5  ;;  %v109_v20 = vmul.f32 0.5, %v77_v16  ;;  %v78_v22 = vld [vmem:[#allocation5 + $0x30] sm:$0xff]  ;;  %v79_v26 = vld [vmem:[#allocation5 + $0x38] sm:$0xff]  ;;  %v48_v27 = vld [vmem:[#allocation2 + $0x40] sm:$0xff]  ;;  %p274_p5 = por %p273_p4, %p272_p3 }
  0x2c   :  { %168 = vst [vmem:[#allocation7] sm:$0xff] %v136_v12  ;;  %v139_v24 = vadd.f32 %v107_v13, %v43_v9  ;;  %v110_v25 = vmul.f32 0.5, %v78_v22  ;;  %v80_v28 = vld [vmem:[#allocation5 + $0x40] sm:$0xff]  ;;  %169 = vst [vmem:[#allocation7 + $0x8] sm:$0xff] %v137_v17  ;;  %v140_v29 = vadd.f32 %v108_v19, %v44_v11  ;;  %v111_v31 = vmul.f32 0.5, %v79_v26  ;;  %v49_v33 = vld [vmem:[#allocation2 + $0x48] sm:$0xff] }
  0x2d   :  { %170 = vst [vmem:[#allocation7 + $0x10] sm:$0xff] %v138_v18  ;;  %v141_v30 = vadd.f32 %v109_v20, %v45_v15  ;;  %v112_v32 = vmul.f32 0.5, %v80_v28  ;;  %v81_v34 = vld [vmem:[#allocation5 + $0x48] sm:$0xff]  ;;  %v50_v35 = vld [vmem:[#allocation2 + $0x50] sm:$0xff]  ;;  %v51_v39 = vld [vmem:[#allocation2 + $0x58] sm:$0xff]  ;;  %p275_p6 = pnand %p274_p5, %p268_p2 }
  0x2e   :  { %171 = vst [vmem:[#allocation7 + $0x18] sm:$0xff] %v139_v24  ;;  %v142_v36 = vadd.f32 %v110_v25, %v46_v21  ;;  %v113_v37 = vmul.f32 0.5, %v81_v34  ;;  %v82_v38 = vld [vmem:[#allocation5 + $0x50] sm:$0xff]  ;;  %v83_v40 = vld [vmem:[#allocation5 + $0x58] sm:$0xff]  ;;  %172 = vst [vmem:[#allocation7 + $0x20] sm:$0xff] %v140_v29  ;;  %v143_v41 = vadd.f32 %v111_v31, %v47_v23 }
  0x2f   :  { %173 = vst [vmem:[#allocation7 + $0x28] sm:$0xff] %v141_v30  ;;  %v144_v42 = vadd.f32 %v112_v32, %v48_v27  ;;  %v114_v43 = vmul.f32 0.5, %v82_v38  ;;  %v115_v44 = vmul.f32 0.5, %v83_v40  ;;  %v52_v45 = vld [vmem:[#allocation2 + $0x60] sm:$0xff]  ;;  %v53_v47 = vld [vmem:[#allocation2 + $0x68] sm:$0xff]  ;;  %v54_v51 = vld [vmem:[#allocation2 + $0x70] sm:$0xff] }
  0x30   :  { %v84_v46 = vld [vmem:[#allocation5 + $0x60] sm:$0xff]  ;;  %174 = vst [vmem:[#allocation7 + $0x30] sm:$0xff] %v142_v36  ;;  %v145_v48 = vadd.f32 %v113_v37, %v49_v33  ;;  %v85_v50 = vld [vmem:[#allocation5 + $0x68] sm:$0xff]  ;;  %v86_v52 = vld [vmem:[#allocation5 + $0x70] sm:$0xff] }
  0x31   :  { %v116_v49 = vmul.f32 0.5, %v84_v46  ;;  %175 = vst [vmem:[#allocation7 + $0x38] sm:$0xff] %v143_v41  ;;  %176 = vst [vmem:[#allocation7 + $0x40] sm:$0xff] %v144_v42  ;;  %v146_v53 = vadd.f32 %v114_v43, %v50_v35  ;;  %v147_v54 = vadd.f32 %v115_v44, %v51_v39  ;;  %v117_v55 = vmul.f32 0.5, %v85_v50  ;;  %v55_v57 = vld [vmem:[#allocation2 + $0x78] sm:$0xff]  ;;  %v56_v59 = vld [vmem:[#allocation2 + $0x80] sm:$0xff] }
  0x32   :  { %v118_v56 = vmul.f32 0.5, %v86_v52  ;;  %v87_v58 = vld [vmem:[#allocation5 + $0x78] sm:$0xff]  ;;  %177 = vst [vmem:[#allocation7 + $0x48] sm:$0xff] %v145_v48  ;;  %v88_v62 = vld [vmem:[#allocation5 + $0x80] sm:$0xff]  ;;  %v57_v63 = vld [vmem:[#allocation2 + $0x88] sm:$0xff] }
  0x33   :  { %v148_v60 = vadd.f32 %v116_v49, %v52_v45  ;;  %v119_v61 = vmul.f32 0.5, %v87_v58  ;;  %v89_v0 = vld [vmem:[#allocation5 + $0x88] sm:$0xff]  ;;  %178 = vst [vmem:[#allocation7 + $0x50] sm:$0xff] %v146_v53  ;;  %179 = vst [vmem:[#allocation7 + $0x58] sm:$0xff] %v147_v54  ;;  %v149_v1 = vadd.f32 %v117_v55, %v53_v47  ;;  %v120_v3 = vmul.f32 0.5, %v88_v62  ;;  %v58_v5 = vld [vmem:[#allocation2 + $0x90] sm:$0xff] }
  0x34   :  { %v150_v2 = vadd.f32 %v118_v56, %v54_v51  ;;  %v121_v4 = vmul.f32 0.5, %v89_v0  ;;  %v90_v6 = vld [vmem:[#allocation5 + $0x90] sm:$0xff]  ;;  %v59_v7 = vld [vmem:[#allocation2 + $0x98] sm:$0xff]  ;;  %v60_v11 = vld [vmem:[#allocation2 + $0xa0] sm:$0xff] }
  0x35   :  { %180 = vst [vmem:[#allocation7 + $0x60] sm:$0xff] %v148_v60  ;;  %v151_v8 = vadd.f32 %v119_v61, %v55_v57  ;;  %v122_v9 = vmul.f32 0.5, %v90_v6  ;;  %v91_v10 = vld [vmem:[#allocation5 + $0x98] sm:$0xff]  ;;  %v92_v12 = vld [vmem:[#allocation5 + $0xa0] sm:$0xff]  ;;  %181 = vst [vmem:[#allocation7 + $0x68] sm:$0xff] %v149_v1  ;;  %v152_v13 = vadd.f32 %v120_v3, %v56_v59 }
  0x36   :  { %182 = vst [vmem:[#allocation7 + $0x70] sm:$0xff] %v150_v2  ;;  %v153_v14 = vadd.f32 %v121_v4, %v57_v63  ;;  %v123_v15 = vmul.f32 0.5, %v91_v10  ;;  %v124_v16 = vmul.f32 0.5, %v92_v12  ;;  %v61_v17 = vld [vmem:[#allocation2 + $0xa8] sm:$0xff]  ;;  %v62_v19 = vld [vmem:[#allocation2 + $0xb0] sm:$0xff]  ;;  %v63_v23 = vld [vmem:[#allocation2 + $0xb8] sm:$0xff] }
  0x37   :  { %v93_v18 = vld [vmem:[#allocation5 + $0xa8] sm:$0xff]  ;;  %183 = vst [vmem:[#allocation7 + $0x78] sm:$0xff] %v151_v8  ;;  %v154_v20 = vadd.f32 %v122_v9, %v58_v5  ;;  %v94_v22 = vld [vmem:[#allocation5 + $0xb0] sm:$0xff]  ;;  %v95_v24 = vld [vmem:[#allocation5 + $0xb8] sm:$0xff] }
  0x38   :  { %v125_v21 = vmul.f32 0.5, %v93_v18  ;;  %184 = vst [vmem:[#allocation7 + $0x80] sm:$0xff] %v152_v13  ;;  %185 = vst [vmem:[#allocation7 + $0x88] sm:$0xff] %v153_v14  ;;  %v155_v25 = vadd.f32 %v123_v15, %v59_v7  ;;  %v156_v26 = vadd.f32 %v124_v16, %v60_v11  ;;  %v126_v27 = vmul.f32 0.5, %v94_v22  ;;  %v64_v29 = vld [vmem:[#allocation2 + $0xc0] sm:$0xff]  ;;  %v65_v31 = vld [vmem:[#allocation2 + $0xc8] sm:$0xff] }
  0x39   :  { %v127_v28 = vmul.f32 0.5, %v95_v24  ;;  %v96_v30 = vld [vmem:[#allocation5 + $0xc0] sm:$0xff]  ;;  %186 = vst [vmem:[#allocation7 + $0x90] sm:$0xff] %v154_v20  ;;  %v97_v34 = vld [vmem:[#allocation5 + $0xc8] sm:$0xff]  ;;  %v66_v35 = vld [vmem:[#allocation2 + $0xd0] sm:$0xff] }
  0x3a   :  { %v157_v32 = vadd.f32 %v125_v21, %v61_v17  ;;  %v128_v33 = vmul.f32 0.5, %v96_v30  ;;  %v98_v36 = vld [vmem:[#allocation5 + $0xd0] sm:$0xff]  ;;  %187 = vst [vmem:[#allocation7 + $0x98] sm:$0xff] %v155_v25  ;;  %188 = vst [vmem:[#allocation7 + $0xa0] sm:$0xff] %v156_v26  ;;  %v158_v37 = vadd.f32 %v126_v27, %v62_v19  ;;  %v129_v39 = vmul.f32 0.5, %v97_v34  ;;  %v67_v41 = vld [vmem:[#allocation2 + $0xd8] sm:$0xff] }
  0x3b   :  { %v159_v38 = vadd.f32 %v127_v28, %v63_v23  ;;  %v130_v40 = vmul.f32 0.5, %v98_v36  ;;  %v99_v42 = vld [vmem:[#allocation5 + $0xd8] sm:$0xff]  ;;  %v68_v43 = vld [vmem:[#allocation2 + $0xe0] sm:$0xff]  ;;  %v69_v47 = vld [vmem:[#allocation2 + $0xe8] sm:$0xff] }
  0x3c   :  { %189 = vst [vmem:[#allocation7 + $0xa8] sm:$0xff] %v157_v32  ;;  %v160_v44 = vadd.f32 %v128_v33, %v64_v29  ;;  %v131_v45 = vmul.f32 0.5, %v99_v42  ;;  %v100_v46 = vld [vmem:[#allocation5 + $0xe0] sm:$0xff]  ;;  %v101_v48 = vld [vmem:[#allocation5 + $0xe8] sm:$0xff]  ;;  %190 = vst [vmem:[#allocation7 + $0xb0] sm:$0xff] %v158_v37  ;;  %v161_v49 = vadd.f32 %v129_v39, %v65_v31 }
  0x3d   :  { %191 = vst [vmem:[#allocation7 + $0xb8] sm:$0xff] %v159_v38  ;;  %v162_v50 = vadd.f32 %v130_v40, %v66_v35  ;;  %v132_v51 = vmul.f32 0.5, %v100_v46  ;;  %v133_v52 = vmul.f32 0.5, %v101_v48  ;;  %v70_v53 = vld [vmem:[#allocation2 + $0xf0] sm:$0xff]  ;;  %v71_v57 = vld [vmem:[#allocation2 + $0xf8] sm:$0xff] }
  0x3e   :  { %v102_v54 = vld [vmem:[#allocation5 + $0xf0] sm:$0xff]  ;;  %192 = vst [vmem:[#allocation7 + $0xc0] sm:$0xff] %v160_v44  ;;  %v163_v55 = vadd.f32 %v131_v45, %v67_v41  ;;  %v103_v58 = vld [vmem:[#allocation5 + $0xf8] sm:$0xff]  ;;  %193 = vst [vmem:[#allocation7 + $0xc8] sm:$0xff] %v161_v49 }
  0x3f   :  { %v134_v56 = vmul.f32 0.5, %v102_v54  ;;  %194 = vst [vmem:[#allocation7 + $0xd0] sm:$0xff] %v162_v50  ;;  %v164_v59 = vadd.f32 %v132_v51, %v68_v43  ;;  %v165_v60 = vadd.f32 %v133_v52, %v69_v47  ;;  %v135_v61 = vmul.f32 0.5, %v103_v58 }
  0x40   :  { %195 = vst [vmem:[#allocation7 + $0xd8] sm:$0xff] %v163_v55 }
  0x41   :  { %v166_v62 = vadd.f32 %v134_v56, %v70_v53  ;;  %196 = vst [vmem:[#allocation7 + $0xe0] sm:$0xff] %v164_v59  ;;  %197 = vst [vmem:[#allocation7 + $0xe8] sm:$0xff] %v165_v60  ;;  %v167_v63 = vadd.f32 %v135_v61, %v71_v57 }
  0x43   :  { %198 = vst [vmem:[#allocation7 + $0xf0] sm:$0xff] %v166_v62  ;;  %199 = vst [vmem:[#allocation7 + $0xf8] sm:$0xff] %v167_v63 }
  0x44   :  { %278 = shalt.err (!%p275_p6)
}
  0x45   :  { %s279_s10 = scalar_lea.hbm %s362_s2, 4096 }
  0x46   :  { %p280_p7 = scmp.ne.s32.totalorder %s362_s2, %s279_s10  ;;  %p283_p8 = scmp.lt.u32.totalorder %s279_s10, %s362_s2 }
  0x48   :  { %p285_p9 = pnand %p283_p8, %p280_p7 }
  0x4a   :  { %288 = shalt.err (!%p285_p9)
}
  0x4b   :  { %211 = dma.vmem_to_hbm [thread:$0]  %s206_s6, 4096, %s362_s2, [#allocation4], %s296_s19, %s296_s19, %s297_s20  }
  0x4c   :  { %293 = dma.done.wait [#allocation4], 4096  }
  0x4d   :  { %294 = vsyncadd [#allocation4], 4294963200 }
  0x4e   :  { %215 = vsyncpa [#allocation3], 1 }
  0x4f   :  { %216 = vsyncpa [#allocation6], 1 }
  0x50   :  { %217 = vsyncpa [#allocation4], 1 }

</bundles_post_ra>
